<compile_context>
chip_gen: v6e
topology: v6e:2x2x1
jax: 0.10.0
libtpu: 0.0.40
codegen_flags: <defaults>
</compile_context>

<pallas_src>
import functools

import jax
import jax.numpy as jnp
import numpy as np
from jax.experimental import pallas as pl
from jax.experimental.pallas import tpu as pltpu


def _round_up(x, m):
    return (x + m - 1) // m * m


def make_discriminator_kernel(f_max, T_max):
    """Fused shifted-matmul convs + ReLU + max-pool + highway + linear (1 batch row/step)."""

    def kernel(emb_ref, w_ref, b_ref, mask_ref, wh_ref, bh_ref, wo_ref, bo_ref, out_ref):
        # emb_ref : (L_pad, K_pad) bf16   time-major embedded input (batch dim squeezed)
        # w_ref   : (f_max, K_pad, N_pad) bf16   per-offset conv weights, branches packed on N
        # b_ref   : (1, N_pad) f32
        # mask_ref: (T_max, N_pad) f32   1.0 where (t, filter-column) is a valid conv position
        # wh_ref  : (N_pad, N_pad) f32 ; bh_ref : (1, N_pad) f32
        # wo_ref  : (N_pad, 2) f32     ; bo_ref : (1, 2) f32
        acc = jnp.dot(emb_ref[0:T_max, :], w_ref[0],
                      preferred_element_type=jnp.float32)
        for df in range(1, f_max):                       # shifted-window slices are free views
            acc += jnp.dot(emb_ref[df:df + T_max, :], w_ref[df],
                           preferred_element_type=jnp.float32)

        # bias + ReLU; zero invalid timesteps (ReLU output >= 0, so 0 never wins the max)
        s = jnp.maximum(acc + b_ref[...], 0.0) * mask_ref[...]
        feat = jnp.max(s, axis=0, keepdims=True)         # (1, N_pad)  temporal max-pool

        # highway gating (padded feature columns stay exactly 0 through the whole chain)
        h = jnp.dot(feat, wh_ref[...], preferred_element_type=jnp.float32) + bh_ref[...]
        sg = jax.nn.sigmoid(h)
        pred = sg * jnp.maximum(h, 0.0) + (1.0 - sg) * feat

        # feature2out (dropout is identity in eval mode)
        out_ref[...] = jnp.dot(pred, wo_ref[...],
                               preferred_element_type=jnp.float32) + bo_ref[...]

    return kernel


@functools.partial(jax.jit, static_argnums=(2,))
def discriminator_forward(inp, params, filter_sizes):
    emb_table = params["emb"]                            # (V, E)
    B, C, L = inp.shape
    E = emb_table.shape[1]
    num_filters = tuple(int(w.shape[0]) for w, _ in params["convs"])

    f_max = max(filter_sizes)
    f_min = min(filter_sizes)
    T_max = L - f_min + 1                                # longest conv output length
    K = C * E
    K_pad = _round_up(K, 128)                            # full-width MXU contraction
    N_tot = sum(num_filters)
    N_pad = _round_up(N_tot, 128)                        # lane-dense output columns
    L_pad = _round_up(max(L, T_max + f_max - 1), 8)

    # --- embedded input: gather (XLA glue), time-major, (c,e)-flattened, padded, bf16 ---
    emb2 = emb_table[jnp.transpose(inp, (0, 2, 1))]      # (B, L, C, E)
    emb2 = emb2.reshape(B, L, K).astype(jnp.bfloat16)
    emb2 = jnp.pad(emb2, ((0, 0), (0, L_pad - L), (0, K_pad - K)))

    # --- pack all conv branches into one weight/bias/mask set (fused along N) ---
    w_all = jnp.zeros((f_max, K_pad, N_pad), jnp.float32)
    b_all = jnp.zeros((1, N_pad), jnp.float32)
    mask = np.zeros((T_max, N_pad), np.float32)
    off = 0
    for f, n, (w, b) in zip(filter_sizes, num_filters, params["convs"]):
        for df in range(f):
            w_df = w[:, :, df, :].reshape(n, K).T        # (K, n), (c, e)-flattened
            w_all = w_all.at[df, :K, off:off + n].set(w_df)
        b_all = b_all.at[0, off:off + n].set(b)
        mask[:L - f + 1, off:off + n] = 1.0              # valid conv positions for this branch
        off += n
    w_all = w_all.astype(jnp.bfloat16)
    mask = jnp.asarray(mask)

    # --- highway / output weights, zero-padded to N_pad (pads contribute exactly 0) ---
    F_dim = params["wh"].shape[0]
    wh_t = jnp.zeros((N_pad, N_pad), jnp.float32).at[:F_dim, :F_dim].set(params["wh"].T)
    bh = jnp.zeros((1, N_pad), jnp.float32).at[0, :F_dim].set(params["bh"])
    wo_t = jnp.zeros((N_pad, 2), jnp.float32).at[:F_dim, :].set(params["wo"].T)
    bo = params["bo"].reshape(1, 2)

    kernel_inputs = (emb2, w_all, b_all, mask, wh_t, bh, wo_t, bo)
    bytes_accessed = sum(int(np.prod(x.shape)) * x.dtype.itemsize for x in kernel_inputs)
    bytes_accessed += B * 2 * 4
    flops = B * (2 * f_max * T_max * K_pad * N_pad + 2 * N_pad * N_pad + 2 * N_pad * 2)

    out = pl.pallas_call(
        make_discriminator_kernel(f_max, T_max),
        out_shape=jax.ShapeDtypeStruct((B, 1, 2), jnp.float32),
        grid=(B,),
        in_specs=[
            pl.BlockSpec((None, L_pad, K_pad), lambda b: (b, 0, 0)),   # streamed per batch row
            pl.BlockSpec((f_max, K_pad, N_pad), lambda b: (0, 0, 0)),  # resident across grid
            pl.BlockSpec((1, N_pad), lambda b: (0, 0)),
            pl.BlockSpec((T_max, N_pad), lambda b: (0, 0)),
            pl.BlockSpec((N_pad, N_pad), lambda b: (0, 0)),
            pl.BlockSpec((1, N_pad), lambda b: (0, 0)),
            pl.BlockSpec((N_pad, 2), lambda b: (0, 0)),
            pl.BlockSpec((1, 2), lambda b: (0, 0)),
        ],
        out_specs=pl.BlockSpec((None, 1, 2), lambda b: (b, 0, 0)),
        compiler_params=pltpu.CompilerParams(
            dimension_semantics=("parallel",),           # megacore sharding on v7x
            vmem_limit_bytes=32 * 1024 * 1024),          # explicit, sized for v7x/v5e limits
        cost_estimate=pl.CostEstimate(
            flops=flops, transcendentals=B * N_pad, bytes_accessed=bytes_accessed),
    )(*kernel_inputs)
    return out[:, 0, :]


def reference_forward(inp, params, filter_sizes):
    """Pure-JAX reference (lax conv). Conv operands are cast to bf16 to match the kernel's
    MXU operand precision; accumulation and all elementwise math stay f32."""
    emb = params["emb"][inp].astype(jnp.bfloat16)        # (B, C, L, E)
    feats = []
    for f, (w, b) in zip(filter_sizes, params["convs"]):
        conv = jax.lax.conv_general_dilated(
            emb, w.astype(jnp.bfloat16), window_strides=(1, 1), padding="VALID",
            dimension_numbers=("NCHW", "OIHW", "NCHW"),
            preferred_element_type=jnp.float32,
            precision=jax.lax.Precision.HIGHEST)         # (B, n, T, 1) f32
        conv = jax.nn.relu(conv + b[None, :, None, None])
        feats.append(jnp.max(conv[:, :, :, 0], axis=2))  # (B, n)
    feat = jnp.concatenate(feats, axis=1)
    h = jnp.dot(feat, params["wh"].T, precision=jax.lax.Precision.HIGHEST) + params["bh"]
    sg = jax.nn.sigmoid(h)
    pred = sg * jax.nn.relu(h) + (1.0 - sg) * feat
    return jnp.dot(pred, params["wo"].T, precision=jax.lax.Precision.HIGHEST) + params["bo"]


def init_params(key, embed_dim, vocab_size, filter_sizes, num_filters, padding_idx):
    # deterministic init mimicking cfg.dis_init == 'uniform' (U(-0.05, 0.05))
    n_keys = 1 + 2 * len(filter_sizes) + 4
    keys = jax.random.split(key, n_keys)
    u = lambda k, shape: jax.random.uniform(k, shape, jnp.float32, -0.05, 0.05)

    emb = u(keys[0], (vocab_size, embed_dim))
    emb = emb.at[padding_idx].set(0.0)                   # nn.Embedding padding_idx row

    convs = []
    ki = 1
    for n, f in zip(num_filters, filter_sizes):
        w = u(keys[ki], (n, 5, f, embed_dim))            # Conv2d(5, n, (f, embed_dim)) weight
        b = u(keys[ki + 1], (n,))
        convs.append((w, b))
        ki += 2

    F_dim = sum(num_filters)
    wh = u(keys[ki], (F_dim, F_dim)); bh = u(keys[ki + 1], (F_dim,))
    wo = u(keys[ki + 2], (2, F_dim)); bo = u(keys[ki + 3], (2,))
    return dict(emb=emb, convs=convs, wh=wh, bh=bh, wo=wo, bo=bo)


if __name__ == "__main__":
    embed_dim = 32
    vocab_size = 64
    filter_sizes = (2, 3)
    num_filters = (16, 16)
    padding_idx = 0
    B, L = 2, 8

    key = jax.random.PRNGKey(0)
    pkey, ikey = jax.random.split(key)
    params = init_params(pkey, embed_dim, vocab_size, filter_sizes, num_filters, padding_idx)

    inp = jax.random.randint(ikey, (B, 5, L), 0, vocab_size, dtype=jnp.int32)

    out = discriminator_forward(inp, params, filter_sizes)
    out = jax.block_until_ready(out)
    assert out.shape == (B, 2) and out.dtype == jnp.float32

    ref = jax.block_until_ready(reference_forward(inp, params, filter_sizes))
    assert jnp.allclose(out, ref, rtol=1e-3, atol=1e-4), (out, ref)

    print("KERNEL_OK")
</pallas_src>

<mosaic_0001>
module attributes {stable_mosaic.version = 11 : i64} {
  func.func @kernel(%arg0: i32, %arg1: memref<1x16x256xbf16, #tpu.memory_space<vmem>>, %arg2: memref<3x256x128xbf16, #tpu.memory_space<vmem>>, %arg3: memref<1x128xf32, #tpu.memory_space<vmem>>, %arg4: memref<7x128xf32, #tpu.memory_space<vmem>>, %arg5: memref<128x128xf32, #tpu.memory_space<vmem>>, %arg6: memref<1x128xf32, #tpu.memory_space<vmem>>, %arg7: memref<128x2xf32, #tpu.memory_space<vmem>>, %arg8: memref<1x2xf32, #tpu.memory_space<vmem>>, %arg9: memref<1x1x2xf32, #tpu.memory_space<vmem>>) attributes {dimension_semantics = [#tpu.dimension_semantics<parallel>], iteration_bounds = array<i64: 2>, scalar_prefetch = 0 : i64, scratch_operands = 0 : i64, tpu.core_type = #tpu.core_type<tc>, window_params = [{transform_indices = @transform_0, window_bounds = array<i64: 1, 16, 256>}, {pipeline_mode = #tpu.pipeline_mode<synchronous>, transform_indices = @transform_1, window_bounds = array<i64: 3, 256, 128>}, {pipeline_mode = #tpu.pipeline_mode<synchronous>, transform_indices = @transform_2, window_bounds = array<i64: 1, 128>}, {pipeline_mode = #tpu.pipeline_mode<synchronous>, transform_indices = @transform_3, window_bounds = array<i64: 7, 128>}, {pipeline_mode = #tpu.pipeline_mode<synchronous>, transform_indices = @transform_4, window_bounds = array<i64: 128, 128>}, {pipeline_mode = #tpu.pipeline_mode<synchronous>, transform_indices = @transform_5, window_bounds = array<i64: 1, 128>}, {pipeline_mode = #tpu.pipeline_mode<synchronous>, transform_indices = @transform_6, window_bounds = array<i64: 128, 2>}, {pipeline_mode = #tpu.pipeline_mode<synchronous>, transform_indices = @transform_7, window_bounds = array<i64: 1, 2>}, {transform_indices = @transform_8, window_bounds = array<i64: 1, 1, 2>}]} {
    %c0 = arith.constant 0 : index
    %c0_0 = arith.constant 0 : index
    %c0_1 = arith.constant 0 : index
    %0 = vector.load %arg1[%c0, %c0_0, %c0_1] : memref<1x16x256xbf16, #tpu.memory_space<vmem>>, vector<1x7x256xbf16>
    %1 = vector.shape_cast %0 : vector<1x7x256xbf16> to vector<7x256xbf16>
    %c0_2 = arith.constant 0 : index
    %c0_3 = arith.constant 0 : index
    %c0_4 = arith.constant 0 : index
    %2 = vector.load %arg2[%c0_2, %c0_3, %c0_4] : memref<3x256x128xbf16, #tpu.memory_space<vmem>>, vector<1x256x128xbf16>
    %3 = vector.shape_cast %2 : vector<1x256x128xbf16> to vector<256x128xbf16>
    %cst = arith.constant dense<0.000000e+00> : vector<7x128xf32>
    %4 = tpu.matmul %1, %3, %cst {dimension_numbers = #tpu.dot_dimension_numbers<[1], [0], [0], [1], [0, 0, 1, 1], [], []>} : vector<7x256xbf16>, vector<256x128xbf16>, vector<7x128xf32> -> vector<7x128xf32>
    %c0_5 = arith.constant 0 : index
    %c1 = arith.constant 1 : index
    %c0_6 = arith.constant 0 : index
    %5 = vector.load %arg1[%c0_5, %c1, %c0_6] : memref<1x16x256xbf16, #tpu.memory_space<vmem>>, vector<1x7x256xbf16>
    %6 = vector.shape_cast %5 : vector<1x7x256xbf16> to vector<7x256xbf16>
    %c1_7 = arith.constant 1 : index
    %c0_8 = arith.constant 0 : index
    %c0_9 = arith.constant 0 : index
    %7 = vector.load %arg2[%c1_7, %c0_8, %c0_9] : memref<3x256x128xbf16, #tpu.memory_space<vmem>>, vector<1x256x128xbf16>
    %8 = vector.shape_cast %7 : vector<1x256x128xbf16> to vector<256x128xbf16>
    %cst_10 = arith.constant dense<0.000000e+00> : vector<7x128xf32>
    %9 = tpu.matmul %6, %8, %cst_10 {dimension_numbers = #tpu.dot_dimension_numbers<[1], [0], [0], [1], [0, 0, 1, 1], [], []>} : vector<7x256xbf16>, vector<256x128xbf16>, vector<7x128xf32> -> vector<7x128xf32>
    %10 = arith.addf %4, %9 : vector<7x128xf32>
    %c0_11 = arith.constant 0 : index
    %c2 = arith.constant 2 : index
    %c0_12 = arith.constant 0 : index
    %11 = vector.load %arg1[%c0_11, %c2, %c0_12] : memref<1x16x256xbf16, #tpu.memory_space<vmem>>, vector<1x7x256xbf16>
    %12 = vector.shape_cast %11 : vector<1x7x256xbf16> to vector<7x256xbf16>
    %c2_13 = arith.constant 2 : index
    %c0_14 = arith.constant 0 : index
    %c0_15 = arith.constant 0 : index
    %13 = vector.load %arg2[%c2_13, %c0_14, %c0_15] : memref<3x256x128xbf16, #tpu.memory_space<vmem>>, vector<1x256x128xbf16>
    %14 = vector.shape_cast %13 : vector<1x256x128xbf16> to vector<256x128xbf16>
    %cst_16 = arith.constant dense<0.000000e+00> : vector<7x128xf32>
    %15 = tpu.matmul %12, %14, %cst_16 {dimension_numbers = #tpu.dot_dimension_numbers<[1], [0], [0], [1], [0, 0, 1, 1], [], []>} : vector<7x256xbf16>, vector<256x128xbf16>, vector<7x128xf32> -> vector<7x128xf32>
    %16 = arith.addf %10, %15 : vector<7x128xf32>
    %c0_17 = arith.constant 0 : index
    %c0_18 = arith.constant 0 : index
    %17 = vector.load %arg3[%c0_17, %c0_18] : memref<1x128xf32, #tpu.memory_space<vmem>>, vector<1x128xf32>
    %18 = vector.broadcast %17 : vector<1x128xf32> to vector<7x128xf32>
    %19 = arith.addf %16, %18 : vector<7x128xf32>
    %cst_19 = arith.constant 0.000000e+00 : f32
    %20 = vector.broadcast %cst_19 : f32 to vector<7x128xf32>
    %21 = arith.maximumf %19, %20 : vector<7x128xf32>
    %c0_20 = arith.constant 0 : index
    %c0_21 = arith.constant 0 : index
    %22 = vector.load %arg4[%c0_20, %c0_21] : memref<7x128xf32, #tpu.memory_space<vmem>>, vector<7x128xf32>
    %23 = arith.mulf %21, %22 : vector<7x128xf32>
    %cst_22 = arith.constant dense<0xFF800000> : vector<128xf32>
    %24 = vector.multi_reduction <maximumf>, %23, %cst_22 [0] : vector<7x128xf32> to vector<128xf32>
    %25 = vector.shape_cast %24 : vector<128xf32> to vector<1x128xf32>
    %c0_23 = arith.constant 0 : index
    %c0_24 = arith.constant 0 : index
    %26 = vector.load %arg5[%c0_23, %c0_24] : memref<128x128xf32, #tpu.memory_space<vmem>>, vector<128x128xf32>
    %cst_25 = arith.constant dense<0.000000e+00> : vector<1x128xf32>
    %27 = tpu.matmul %25, %26, %cst_25 {dimension_numbers = #tpu.dot_dimension_numbers<[1], [0], [0], [1], [0, 0, 1, 1], [], []>} : vector<1x128xf32>, vector<128x128xf32>, vector<1x128xf32> -> vector<1x128xf32>
    %c0_26 = arith.constant 0 : index
    %c0_27 = arith.constant 0 : index
    %28 = vector.load %arg6[%c0_26, %c0_27] : memref<1x128xf32, #tpu.memory_space<vmem>>, vector<1x128xf32>
    %29 = arith.addf %27, %28 : vector<1x128xf32>
    %30 = arith.negf %29 : vector<1x128xf32>
    %31 = math.exp %30 : vector<1x128xf32>
    %cst_28 = arith.constant 1.000000e+00 : f32
    %32 = vector.broadcast %cst_28 : f32 to vector<1x128xf32>
    %33 = arith.addf %32, %31 : vector<1x128xf32>
    %34 = arith.divf %32, %33 : vector<1x128xf32>
    %cst_29 = arith.constant 0.000000e+00 : f32
    %35 = vector.broadcast %cst_29 : f32 to vector<1x128xf32>
    %36 = arith.maximumf %29, %35 : vector<1x128xf32>
    %37 = arith.mulf %34, %36 : vector<1x128xf32>
    %cst_30 = arith.constant 1.000000e+00 : f32
    %38 = vector.broadcast %cst_30 : f32 to vector<1x128xf32>
    %39 = arith.subf %38, %34 : vector<1x128xf32>
    %40 = arith.mulf %39, %25 : vector<1x128xf32>
    %41 = arith.addf %37, %40 : vector<1x128xf32>
    %c0_31 = arith.constant 0 : index
    %c0_32 = arith.constant 0 : index
    %42 = vector.load %arg7[%c0_31, %c0_32] : memref<128x2xf32, #tpu.memory_space<vmem>>, vector<128x2xf32>
    %cst_33 = arith.constant dense<0.000000e+00> : vector<1x2xf32>
    %43 = tpu.matmul %41, %42, %cst_33 {dimension_numbers = #tpu.dot_dimension_numbers<[1], [0], [0], [1], [0, 0, 1, 1], [], []>} : vector<1x128xf32>, vector<128x2xf32>, vector<1x2xf32> -> vector<1x2xf32>
    %c0_34 = arith.constant 0 : index
    %c0_35 = arith.constant 0 : index
    %44 = vector.load %arg8[%c0_34, %c0_35] : memref<1x2xf32, #tpu.memory_space<vmem>>, vector<1x2xf32>
    %45 = arith.addf %43, %44 : vector<1x2xf32>
    %c0_36 = arith.constant 0 : index
    %c0_37 = arith.constant 0 : index
    %c0_38 = arith.constant 0 : index
    %46 = vector.load %arg9[%c0_36, %c0_37, %c0_38] : memref<1x1x2xf32, #tpu.memory_space<vmem>>, vector<1x1x2xf32>
    %47 = vector.shape_cast %46 : vector<1x1x2xf32> to vector<1x2xf32>
    %48 = vector.shape_cast %45 : vector<1x2xf32> to vector<1x1x2xf32>
    tpu.vector_store %arg9[%c0_36, %c0_37, %c0_38], %48 {strides = array<i32>} : memref<1x1x2xf32, #tpu.memory_space<vmem>>, vector<1x1x2xf32>,
    return
  }
  func.func @transform_0(%arg0: i32) -> (i32, i32, i32) {
    %c0_i32 = arith.constant 0 : i32
    %c0_i32_0 = arith.constant 0 : i32
    %c0_i32_1 = arith.constant 0 : i32
    return %arg0, %c0_i32, %c0_i32_0 : i32, i32, i32
  }
  func.func @transform_1(%arg0: i32) -> (i32, i32, i32) {
    %c0_i32 = arith.constant 0 : i32
    %c0_i32_0 = arith.constant 0 : i32
    %c0_i32_1 = arith.constant 0 : i32
    %c0_i32_2 = arith.constant 0 : i32
    return %c0_i32, %c0_i32_0, %c0_i32_1 : i32, i32, i32
  }
  func.func @transform_2(%arg0: i32) -> (i32, i32) {
    %c0_i32 = arith.constant 0 : i32
    %c0_i32_0 = arith.constant 0 : i32
    %c0_i32_1 = arith.constant 0 : i32
    return %c0_i32, %c0_i32_0 : i32, i32
  }
  func.func @transform_3(%arg0: i32) -> (i32, i32) {
    %c0_i32 = arith.constant 0 : i32
    %c0_i32_0 = arith.constant 0 : i32
    %c0_i32_1 = arith.constant 0 : i32
    return %c0_i32, %c0_i32_0 : i32, i32
  }
  func.func @transform_4(%arg0: i32) -> (i32, i32) {
    %c0_i32 = arith.constant 0 : i32
    %c0_i32_0 = arith.constant 0 : i32
    %c0_i32_1 = arith.constant 0 : i32
    return %c0_i32, %c0_i32_0 : i32, i32
  }
  func.func @transform_5(%arg0: i32) -> (i32, i32) {
    %c0_i32 = arith.constant 0 : i32
    %c0_i32_0 = arith.constant 0 : i32
    %c0_i32_1 = arith.constant 0 : i32
    return %c0_i32, %c0_i32_0 : i32, i32
  }
  func.func @transform_6(%arg0: i32) -> (i32, i32) {
    %c0_i32 = arith.constant 0 : i32
    %c0_i32_0 = arith.constant 0 : i32
    %c0_i32_1 = arith.constant 0 : i32
    return %c0_i32, %c0_i32_0 : i32, i32
  }
  func.func @transform_7(%arg0: i32) -> (i32, i32) {
    %c0_i32 = arith.constant 0 : i32
    %c0_i32_0 = arith.constant 0 : i32
    %c0_i32_1 = arith.constant 0 : i32
    return %c0_i32, %c0_i32_0 : i32, i32
  }
  func.func @transform_8(%arg0: i32) -> (i32, i32, i32) {
    %c0_i32 = arith.constant 0 : i32
    %c0_i32_0 = arith.constant 0 : i32
    %c0_i32_1 = arith.constant 0 : i32
    return %arg0, %c0_i32, %c0_i32_0 : i32, i32, i32
  }
}

</mosaic_0001>

<bundles_post_ra>
// kernel: discriminator_forward.1
= control target key start
LH: loop header
LB: loop body
LE: loop exit
PB: predicated region body
PF: predicated region fallthrough
CT: control target
= control target key end

     0   :  { %13 = vsyncpa [#allocation3], 0  ;;  %s2013_s0 = inlined_call_operand.vmem [shape: bf16[2,16,256], index: 0, kind: input, shape index: {}]   ;;  %s2014_s1 = inlined_call_operand.vmem [shape: bf16[3,256,128], index: 1, kind: input, shape index: {}]   ;;  %s2015_s2 = inlined_call_operand.vmem [shape: f32[1,128], index: 2, kind: input, shape index: {}]   ;;  %s2016_s3 = inlined_call_operand.vmem [shape: f32[7,128], index: 3, kind: input, shape index: {}]   ;;  %s2017_s4 = inlined_call_operand.vmem [shape: f32[128,128], index: 4, kind: input, shape index: {}]   ;;  %s2018_s5 = inlined_call_operand.vmem [shape: f32[1,128], index: 5, kind: input, shape index: {}]   ;;  %s2019_s6 = inlined_call_operand.vmem [shape: f32[128,2], index: 6, kind: input, shape index: {}]   ;;  %s2020_s7 = inlined_call_operand.vmem [shape: f32[1,2], index: 7, kind: input, shape index: {}]   ;;  %s2021_s8 = inlined_call_operand.hbm [shape: f32[2,1,2], index: 8, kind: output, shape index: {}]  }
   0x1   :  { %15 = vsyncpa [#allocation3 + $0x1], 0  ;;  %s1629_s27 = smov 0   ;;  %s1631_s28 = smov 0  }
   0x2   :  { %s1633_s29 = smov 0   ;;  %s1635_s30 = smov 0  }
   0x3 LB: > { %s1650_s9 = sadd.s32 4294967295, %s1579_s30   ;;  %s1123_s10 = sadd.s32 4294967294, %s1579_s30   ;;  %s1579_s30 = sphi %s1635_s30, %s2027_s30   ;;  %s1575_s29 = sphi %s1633_s29, %s2026_s29   ;;  %s1571_s28 = sphi %s1631_s28, %s2025_s28   ;;  %s1567_s27 = sphi %s1629_s27, %s2024_s27  }
   0x4   : > { %s1654_s11 = sadd.s32 1, %s1579_s30   ;;  %s201_s12 = sadd.s32 1, %s1575_s29 }
   0x5   : > { %s198_s13 = ssub.s32 %s1579_s30, %s1654_s11  ;;  %p211_p0 = scmp.ne.s32.totalorder %s1575_s29, %s1571_s28 }
   0x6   : > { %p199_p1 = scmp.eq.s32.totalorder %s198_s13, 0  ;;  %p212_p2 = scmp.eq.s32.totalorder %s1650_s9, 1 }
   0x7   : > { %p217_p3 = scmp.ne.s32.totalorder %s1571_s28, %s1567_s27  ;;  %p218_p4 = scmp.eq.s32.totalorder %s1123_s10, 1 }
   0x8   : > { %s1665_s14 = scalar_select %p199_p1, %s1575_s29, %s201_s12  }
   0x9   : > { %p1667_p5 = por %p212_p2, %p211_p0  ;;  %p1671_p6 = por %p218_p4, %p217_p3 }
   0xa   : > { %p1126_p7 = scmp.ge.s32.totalorder %s1579_s30, 1  ;;  %p265_p8 = scmp.lt.s32.totalorder %s1579_s30, 3 }
   0xc   : > { %p266_p9 = pnand %p1126_p7, %p265_p8 }
   0xd   : > { %p298_p10 = scmp.lt.s32.totalorder (!%p266_p9), %s1650_s9, 1  ;;  %s296_s22 = sand.u32 (!%p266_p9), 1, %s1571_s28  }
   0xe   : > { %269 = sbr.rel (%p266_p9) target bundleno = 744 (0x2e8), region = 52  ;;  %s1247_s25 = sshll.u32 (!%p266_p9), %s1650_s9, 4 }
   0xf   : > { %s297_s26 = scalar_lea.vmem (!%p266_p9), [#allocation2], %s296_s22  ;;  %s1056_s18 = scalar_lea.sflag (!%p266_p9), [#allocation3], %s296_s22 }
  0x10   : > { %s1068_s10 = sshll.u32 (!%p266_p9), %s297_s26, 4  ;;  %s1069_s10 = int_to_ptr.vmem [resolvable:$true] %s1068_s10 }
  0x11   : > { %s1519_s19 = scalar_lea.vmem (!%p266_p9), %s1069_s10, 16 }
  0x12   : > { %p1520_p11 = scmp.ne.s32.totalorder (!%p266_p9), %s1069_s10, %s1519_s19 }
  0x13   : > { %v1462_v0 = vld [vmem:[%s2014_s1 + $0xf8] sm:$0xff]   ;;  %v1466_v4 = vld [vmem:[%s2014_s1 + $0xf0] sm:$0xff]   ;;  %v1470_v8 = vld [vmem:[%s2014_s1 + $0xe8] sm:$0xff]   ;;  %s299_s24 = scalar_select %p298_p10, %s1650_s9, 1  ;;  %vm1582_vm0 = vmmov 0   ;;  %vm860_vm1 = vcmask 1046528  }
  0x14   : > { %v1463_v1 = vld [vmem:[%s2014_s1 + $0x78] sm:$0xff]   ;;  %1251 = vmatprep.subr.bf16.mxu0 %v1462_v0  ;;  %v1467_v5 = vld [vmem:[%s2014_s1 + $0x70] sm:$0xff]   ;;  %v1471_v9 = vld [vmem:[%s2014_s1 + $0x68] sm:$0xff]   ;;  %v1581_v0 = vmov 0.0   ;;  %vm1053_vm2 = vcmask 8192   ;;  %p1521_p12 = pnand %p1520_p11, %p1667_p5  ;;  %s1583_s9 = smov [#allocation2]  }
  0x15   : > { %v1464_v2 = vld [vmem:[%s2014_s1 + $0xb8] sm:$0xff]   ;;  %1273 = vmatprep.subr.bf16.mxu1 %v1463_v1  ;;  %v1468_v6 = vld [vmem:[%s2014_s1 + $0xb0] sm:$0xff]   ;;  %v1472_v10 = vld [vmem:[%s2014_s1 + $0xa8] sm:$0xff]   ;;  %s1250_s20 = sshll.u32 %s299_s24, 4  ;;  %s1978_s24 = scalar_lea.hbm %s2021_s8, %s1247_s25 }
  0x16   : > { %v1465_v3 = vld [vmem:[%s2014_s1 + $0x38] sm:$0xff]   ;;  %1252 = vmatpush3.bf16.msra.mxu0 %v1464_v2  ;;  %v1469_v7 = vld [vmem:[%s2014_s1 + $0x30] sm:$0xff]   ;;  %v1473_v11 = vld [vmem:[%s2014_s1 + $0x28] sm:$0xff]   ;;  %s1772_s17 = scalar_lea.vmem %s2013_s0, %s1250_s20  ;;  %p1522_p13 = pneg %p1521_p12 }
  0x17   : > { %1274 = vmatpush3.bf16.msra.mxu1 %v1465_v3  ;;  %1253 = vmatprep.subr.bf16.mxu0 %v1466_v4  ;;  %v1474_v12 = vld [vmem:[%s2014_s1 + $0xe0] sm:$0xff]   ;;  %v1478_v16 = vld [vmem:[%s2014_s1 + $0xd8] sm:$0xff]   ;;  %v1482_v20 = vld [vmem:[%s2014_s1 + $0xd0] sm:$0xff]   ;;  %s1523_s21 = sshll.u32 %s1583_s9, 4  ;;  %s1524_s21 = int_to_ptr.vmem [resolvable:$false] %s1523_s21 }
  0x18   : > { %1275 = vmatprep.subr.bf16.mxu1 %v1467_v5  ;;  %v1475_v13 = vld [vmem:[%s2014_s1 + $0x60] sm:$0xff]   ;;  %v1479_v17 = vld [vmem:[%s2014_s1 + $0x58] sm:$0xff]   ;;  %v1483_v21 = vld [vmem:[%s2014_s1 + $0x50] sm:$0xff]   ;;  %p1526_p0 = scmp.lt.s32.totalorder %s1069_s10, %s1524_s21 }
  0x19   : > { %v1476_v14 = vld [vmem:[%s2014_s1 + $0xa0] sm:$0xff]   ;;  %v1480_v18 = vld [vmem:[%s2014_s1 + $0x98] sm:$0xff]   ;;  %v1484_v22 = vld [vmem:[%s2014_s1 + $0x90] sm:$0xff]  }
  0x1a   : > { %1254 = vmatpush3.bf16.msra.mxu0 %v1468_v6  ;;  %v1477_v15 = vld [vmem:[%s2014_s1 + $0x20] sm:$0xff]   ;;  %v1481_v19 = vld [vmem:[%s2014_s1 + $0x18] sm:$0xff]   ;;  %v1485_v23 = vld [vmem:[%s2014_s1 + $0x10] sm:$0xff]  }
  0x1b   : > { %1276 = vmatpush3.bf16.msra.mxu1 %v1469_v7  ;;  %1255 = vmatprep.subr.bf16.mxu0 %v1470_v8  ;;  %v1486_v24 = vld [vmem:[%s2014_s1 + $0xc8] sm:$0xff]   ;;  %v1490_v28 = vld [vmem:[%s2014_s1 + $0xc0] sm:$0xff]   ;;  %v1496_v35 = vld [vmem:[%s2014_s1 + $0x178] sm:$0xff]  }
  0x1c   : > { %1277 = vmatprep.subr.bf16.mxu1 %v1471_v9  ;;  %v1487_v25 = vld [vmem:[%s2014_s1 + $0x48] sm:$0xff]   ;;  %v1491_v29 = vld [vmem:[%s2014_s1 + $0x40] sm:$0xff]   ;;  %v1497_v44 = vld [vmem:[%s2014_s1 + $0x138] sm:$0xff]  }
  0x1d   : > { %v1488_v26 = vld [vmem:[%s2014_s1 + $0x88] sm:$0xff]   ;;  %v1492_v30 = vld [vmem:[%s2014_s1 + $0x80] sm:$0xff]   ;;  %v1498_v45 = vld [vmem:[%s2014_s1 + $0x170] sm:$0xff]  }
  0x1e   : > { %1256 = vmatpush3.bf16.msra.mxu0 %v1472_v10  ;;  %v1489_v27 = vld [vmem:[%s2014_s1 + $0x8] sm:$0xff]   ;;  %v1493_v31 = vld [vmem:[%s2014_s1] sm:$0xff]   ;;  %v1499_v46 = vld [vmem:[%s2014_s1 + $0x130] sm:$0xff]  }
  0x1f   : > { %1278 = vmatpush3.bf16.msra.mxu1 %v1473_v11  ;;  %1257 = vmatprep.subr.bf16.mxu0 %v1474_v12  ;;  %v304_v32 = vld [vmem:[%s1772_s17] sm:$0xff]  ;;  %v1500_v47 = vld [vmem:[%s2014_s1 + $0x168] sm:$0xff]   ;;  %v1504_v52 = vld [vmem:[%s2014_s1 + $0x158] sm:$0xff]  }
  0x20   : > { %1279 = vmatprep.subr.bf16.mxu1 %v1475_v13  ;;  %v1161_v33 = vcombine.low %v304_v32, %v304_v32  ;;  %v1162_v34 = vcombine.high %v304_v32, %v304_v32  ;;  %v1501_v48 = vld [vmem:[%s2014_s1 + $0x128] sm:$0xff]   ;;  %v1502_v49 = vld [vmem:[%s2014_s1 + $0x160] sm:$0xff]   ;;  %v1505_v54 = vld [vmem:[%s2014_s1 + $0x118] sm:$0xff]  }
  0x21   : > { %v1514_v50 = vld [vmem:[%s1772_s17 + $0x4] ss:$8 sps:$4 sm:$0x1e]   ;;  %v1506_v55 = vld [vmem:[%s2014_s1 + $0x150] sm:$0xff]   ;;  %v883_v63 = vld [vmem:[%s2017_s4 + $0x78] sm:$0xff] }
  0x22   : > { %1258 = vmatpush3.bf16.msra.mxu0 %v1476_v14  ;;  %v383_v36 = vshrl.u32 %v1162_v34, 16  ;;  %v385_v37 = vshll.u32 %v1162_v34, 16  ;;  %657 = vmatprep.mubr.bf16.mxu1 %v1162_v34  ;;  %v376_v38 = vshrl.u32 %v1161_v33, 16  ;;  %v378_v39 = vshll.u32 %v1161_v33, 16  ;;  %v1503_v51 = vld [vmem:[%s2014_s1 + $0x120] sm:$0xff]   ;;  %v1507_v56 = vld [vmem:[%s2014_s1 + $0x110] sm:$0xff]  }
  0x23   : > { %1280 = vmatpush3.bf16.msra.mxu1 %v1477_v15  ;;  %1259 = vmatprep.subr.bf16.mxu0 %v1478_v16  ;;  %v709_v53 = vrot.slane %v1514_v50, 1  ;;  %v1508_v57 = vld [vmem:[%s2014_s1 + $0x148] sm:$0xff]   ;;  %v1510_v59 = vld [vmem:[%s2014_s1 + $0x140] sm:$0xff]   ;;  %v882_v1 = vld [vmem:[%s2017_s4 + $0x70] sm:$0xff] }
  0x24   : > { %1281 = vmatprep.subr.bf16.mxu1 %v1479_v17  ;;  %v387_v40 = vrot.slane %v385_v37, 1  ;;  %v380_v41 = vrot.slane %v378_v39, 1  ;;  %v1509_v58 = vld [vmem:[%s2014_s1 + $0x108] sm:$0xff]   ;;  %v1511_v61 = vld [vmem:[%s2014_s1 + $0x100] sm:$0xff]   ;;  %v879_v4 = vld [vmem:[%s2017_s4 + $0x58] sm:$0xff] }
  0x25   : > { %v1512_v60 = vld [vmem:[%s1772_s17] ss:$8 sps:$4 sm:$0x1e]   ;;  %v878_v5 = vld [vmem:[%s2017_s4 + $0x50] sm:$0xff]  ;;  %v875_v8 = vld [vmem:[%s2017_s4 + $0x38] sm:$0xff]  ;;  %s1525_s17 = scalar_lea.vmem %s1524_s21, 32 }
  0x26   : > { %1260 = vmatpush3.bf16.msra.mxu0 %v1480_v18  ;;  %v388_v42 = vor.u32 %v387_v40, %v383_v36  ;;  %v381_v43 = vor.u32 %v380_v41, %v376_v38  ;;  %v708_v62 = vrot.slane %v1512_v60, 1  ;;  %v881_v2 = vld [vmem:[%s2017_s4 + $0x68] sm:$0xff]  ;;  %v880_v3 = vld [vmem:[%s2017_s4 + $0x60] sm:$0xff]  ;;  %v874_v9 = vld [vmem:[%s2017_s4 + $0x30] sm:$0xff]  ;;  %p1527_p1 = scmp.lt.s32.totalorder %s1525_s17, %s1519_s19 }
  0x27   : > { %1282 = vmatpush3.bf16.msra.mxu1 %v1481_v19  ;;  %1261 = vmatprep.subr.bf16.mxu0 %v1482_v20  ;;  %v877_v6 = vld [vmem:[%s2017_s4 + $0x48] sm:$0xff]  ;;  %v876_v7 = vld [vmem:[%s2017_s4 + $0x40] sm:$0xff]  ;;  %v871_v12 = vld [vmem:[%s2017_s4 + $0x18] sm:$0xff] }
  0x28   : > { %1283 = vmatprep.subr.bf16.mxu1 %v1483_v21  ;;  %519 = vmatprep.mubr.bf16.mxu0 %v388_v42  ;;  %v873_v10 = vld [vmem:[%s2017_s4 + $0x28] sm:$0xff]  ;;  %v872_v11 = vld [vmem:[%s2017_s4 + $0x20] sm:$0xff]  ;;  %v870_v13 = vld [vmem:[%s2017_s4 + $0x10] sm:$0xff]  ;;  %p1528_p2 = por %p1527_p1, %p1526_p0 }
  0x29   : > { %v869_v14 = vld [vmem:[%s2017_s4 + $0x8] sm:$0xff]  ;;  %v868_v15 = vld [vmem:[%s2017_s4] sm:$0xff]  ;;  %v976_v50 = vld [vmem:[%s2019_s6 + $0x50] sm:$0xff] }
  0x2a   : > { %1262 = vmatpush3.bf16.msra.mxu0 %v1484_v22  ;;  %v966_v60 = vld [vmem:[%s2019_s6] sm:$0xff]  ;;  %p1529_p3 = pnand %p1528_p2, %p1522_p13 }
  0x2b   : > { %1284 = vmatpush3.bf16.msra.mxu1 %v1485_v23  ;;  %1263 = vmatprep.subr.bf16.mxu0 %v1486_v24 }
  0x2c   : > { %1285 = vmatprep.subr.bf16.mxu1 %v1487_v25 }
  0x2e   : > { %1264 = vmatpush3.bf16.msra.mxu0 %v1488_v26 }
  0x2f   : > { %1286 = vmatpush3.bf16.msra.mxu1 %v1489_v27  ;;  %1265 = vmatprep.subr.bf16.mxu0 %v1490_v28 }
  0x30   : > { %1287 = vmatprep.subr.bf16.mxu1 %v1491_v29 }
  0x32   : > { %1266 = vmatpush3.bf16.msra.mxu0 %v1492_v30  ;;  %v1245_v30 = vld [vmem:[%s2015_s2] ss:$0 sm:$0xff] }
  0x33   : > { %1288 = vmatpush3.bf16.msra.mxu1 %v1493_v31  ;;  %1295 = vmatprep.subr.bf16.mxu0 %v1496_v35  ;;  %v858_v35 = vld [vmem:[%s2016_s3] sm:$0x7f] }
  0x34   : > { %1351 = vmatprep.subr.mxu1 %v1581_v0 }
  0x35   : > { %520 = vmatmul.mubr.bf16.vlgmr.msra.gmra.mxu0 %v381_v43 }
  0x36   : > { %658 = vmatmul.mubr.bf16.vlgmr.msra.gmra.mxu1 %v1161_v33  ;;  %1296 = vmatpush3.bf16.msra.mxu0 %v1497_v44 }
  0x37   : > { %1297 = vmatprep.subr.bf16.mxu0 %v1498_v45  ;;  %840 = vmatprep.mubr.bf16.mxu0 %v709_v53  ;;  %v981_v45 = vld [vmem:[%s2019_s6 + $0x78] sm:$0xff] }
  0x38   : > { %1352 = vmatpush3.msra.mxu1 %v883_v63  ;;  %1383 = vmatprep.mubr.msk.f32.mxu1 %vm1582_vm0, %v1581_v0  ;;  %v973_v53 = vld [vmem:[%s2019_s6 + $0x38] sm:$0xff] }
  0x39   : > { %1353 = vmatprep.subr.mxu1 %v1581_v0 }
  0x3a   : > { %1298 = vmatpush3.bf16.msra.mxu0 %v1499_v46  ;;  %1354 = vmatpush3.msra.mxu1 %v882_v1  ;;  %v980_v46 = vld [vmem:[%s2019_s6 + $0x70] sm:$0xff] }
  0x3b   : > { %1299 = vmatprep.subr.bf16.mxu0 %v1500_v47  ;;  %1355 = vmatprep.subr.mxu1 %v1581_v0  ;;  %v979_v47 = vld [vmem:[%s2019_s6 + $0x68] sm:$0xff] }
  0x3c   : > { %1356 = vmatpush3.msra.mxu1 %v881_v2 }
  0x3d   : > { %1357 = vmatprep.subr.mxu1 %v1581_v0 }
  0x3e   : > { %1300 = vmatpush3.bf16.msra.mxu0 %v1501_v48  ;;  %1358 = vmatpush3.msra.mxu1 %v880_v3  ;;  %v978_v48 = vld [vmem:[%s2019_s6 + $0x60] sm:$0xff] }
  0x3f   : > { %1301 = vmatprep.subr.bf16.mxu0 %v1502_v49  ;;  %1359 = vmatprep.subr.mxu1 %v1581_v0  ;;  %v977_v49 = vld [vmem:[%s2019_s6 + $0x58] sm:$0xff] }
  0x40   : > { %1360 = vmatpush3.msra.mxu1 %v879_v4 }
  0x41   : > { %1361 = vmatprep.subr.mxu1 %v1581_v0 }
  0x42   : > { %1302 = vmatpush3.bf16.msra.mxu0 %v1503_v51  ;;  %1362 = vmatpush3.msra.mxu1 %v878_v5  ;;  %v975_v51 = vld [vmem:[%s2019_s6 + $0x48] sm:$0xff] }
  0x43   : > { %1303 = vmatprep.subr.bf16.mxu0 %v1504_v52  ;;  %1363 = vmatprep.subr.mxu1 %v1581_v0  ;;  %v974_v52 = vld [vmem:[%s2019_s6 + $0x40] sm:$0xff] }
  0x44   : > { %1364 = vmatpush3.msra.mxu1 %v877_v6 }
  0x45   : > { %1365 = vmatprep.subr.mxu1 %v1581_v0 }
  0x46   : > { %1304 = vmatpush3.bf16.msra.mxu0 %v1505_v54  ;;  %1366 = vmatpush3.msra.mxu1 %v876_v7  ;;  %v972_v54 = vld [vmem:[%s2019_s6 + $0x30] sm:$0xff] }
  0x47   : > { %1305 = vmatprep.subr.bf16.mxu0 %v1506_v55  ;;  %1367 = vmatprep.subr.mxu1 %v1581_v0  ;;  %v971_v55 = vld [vmem:[%s2019_s6 + $0x28] sm:$0xff] }
  0x48   : > { %1368 = vmatpush3.msra.mxu1 %v875_v8 }
  0x49   : > { %1369 = vmatprep.subr.mxu1 %v1581_v0 }
  0x4a   : > { %1306 = vmatpush3.bf16.msra.mxu0 %v1507_v56  ;;  %1370 = vmatpush3.msra.mxu1 %v874_v9  ;;  %v970_v56 = vld [vmem:[%s2019_s6 + $0x20] sm:$0xff] }
  0x4b   : > { %1307 = vmatprep.subr.bf16.mxu0 %v1508_v57  ;;  %1371 = vmatprep.subr.mxu1 %v1581_v0  ;;  %v969_v57 = vld [vmem:[%s2019_s6 + $0x18] sm:$0xff] }
  0x4c   : > { %1372 = vmatpush3.msra.mxu1 %v873_v10  ;;  %v982_v10 = vld [vmem:[%s2020_s7] sm:$0x1] }
  0x4d   : > { %1373 = vmatprep.subr.mxu1 %v1581_v0 }
  0x4e   : > { %1308 = vmatpush3.bf16.msra.mxu0 %v1509_v58  ;;  %1374 = vmatpush3.msra.mxu1 %v872_v11  ;;  %v968_v58 = vld [vmem:[%s2019_s6 + $0x10] sm:$0xff] }
  0x4f   : > { %1309 = vmatprep.subr.bf16.mxu0 %v1510_v59  ;;  %1375 = vmatprep.subr.mxu1 %v1581_v0  ;;  %v967_v59 = vld [vmem:[%s2019_s6 + $0x8] sm:$0xff] }
  0x50   : > { %1376 = vmatpush3.msra.mxu1 %v871_v12 }
  0x51   : > { %1377 = vmatprep.subr.mxu1 %v1581_v0 }
  0x52   : > { %1310 = vmatpush3.bf16.msra.mxu0 %v1511_v61  ;;  %1378 = vmatpush3.msra.mxu1 %v870_v13  ;;  %v884_v61 = vld [vmem:[%s2018_s5] sm:$0x1] }
  0x53   : > { %1386 = vmatprep.subr.mxu0 %v1581_v0  ;;  %1379 = vmatprep.subr.mxu1 %v1581_v0 }
  0x54   : > { %1380 = vmatpush3.msra.mxu1 %v869_v14 }
  0x55   : > { %841 = vmatmul.mubr.bf16.vlgmr.msra.gmra.mxu0 %v708_v62  ;;  %1381 = vmatprep.subr.mxu1 %v1581_v0 }
  0x56   : > { %1418 = vmatprep.mubr.msk.f32.mxu0 %vm1582_vm0, %v1581_v0  ;;  %1382 = vmatpush3.msra.mxu1 %v868_v15 }
  0x57   : > { %1387 = vmatpush3.msra.mxu0 %v981_v45 }
  0x58   : > { %1388 = vmatprep.subr.mxu0 %v1581_v0 }
  0x59   : > { %1389 = vmatpush3.msra.mxu0 %v980_v46 }
  0x5a   : > { %1390 = vmatprep.subr.mxu0 %v1581_v0 }
  0x5b   : > { %1391 = vmatpush3.msra.mxu0 %v979_v47 }
  0x5c   : > { %1392 = vmatprep.subr.mxu0 %v1581_v0 }
  0x5d   : > { %1393 = vmatpush3.msra.mxu0 %v978_v48 }
  0x5e   : > { %1394 = vmatprep.subr.mxu0 %v1581_v0 }
  0x5f   : > { %1395 = vmatpush3.msra.mxu0 %v977_v49 }
  0x60   : > { %1396 = vmatprep.subr.mxu0 %v1581_v0 }
  0x61   : > { %1397 = vmatpush3.msra.mxu0 %v976_v50 }
  0x62   : > { %1398 = vmatprep.subr.mxu0 %v1581_v0 }
  0x63   : > { %1399 = vmatpush3.msra.mxu0 %v975_v51 }
  0x64   : > { %1400 = vmatprep.subr.mxu0 %v1581_v0 }
  0x65   : > { %1401 = vmatpush3.msra.mxu0 %v974_v52 }
  0x66   : > { %1402 = vmatprep.subr.mxu0 %v1581_v0 }
  0x67   : > { %1403 = vmatpush3.msra.mxu0 %v973_v53 }
  0x68   : > { %1404 = vmatprep.subr.mxu0 %v1581_v0 }
  0x69   : > { %1405 = vmatpush3.msra.mxu0 %v972_v54 }
  0x6a   : > { %1406 = vmatprep.subr.mxu0 %v1581_v0 }
  0x6b   : > { %1407 = vmatpush3.msra.mxu0 %v971_v55 }
  0x6c   : > { %1408 = vmatprep.subr.mxu0 %v1581_v0 }
  0x6d   : > { %1409 = vmatpush3.msra.mxu0 %v970_v56 }
  0x6e   : > { %1410 = vmatprep.subr.mxu0 %v1581_v0 }
  0x6f   : > { %1411 = vmatpush3.msra.mxu0 %v969_v57 }
  0x70   : > { %1412 = vmatprep.subr.mxu0 %v1581_v0 }
  0x71   : > { %1413 = vmatpush3.msra.mxu0 %v968_v58 }
  0x72   : > { %1414 = vmatprep.subr.mxu0 %v1581_v0 }
  0x73   : > { %1415 = vmatpush3.msra.mxu0 %v967_v59 }
  0x74   : > { %1416 = vmatprep.subr.mxu0 %v1581_v0 }
  0x75   : > { %1417 = vmatpush3.msra.mxu0 %v966_v60 }
  0xf5   : > { %v1267_v19 = vpop.f32.mrf.mxu0 }
  0xf6   : > { %v1289_v16 = vpop.f32.mrf.mxu1 }
  0xf7   : > { %v1268_v21 = vpop.f32.mrf.mxu0 }
  0xf8   : > { %v1290_v17 = vpop.f32.mrf.mxu1  ;;  %v1269_v24 = vadd.f32 %v1268_v21, %v1267_v19 }
  0xf9   : > { %v1270_v22 = vpop.f32.mrf.mxu0  ;;  %v1291_v25 = vadd.f32 %v1290_v17, %v1289_v16 }
  0xfa   : > { %v1292_v18 = vpop.f32.mrf.mxu1 }
  0xfb   : > { %v1271_v23 = vpop.f32.mrf.mxu0  ;;  %v660_v28 = vadd.f32 %v1291_v25, %v1269_v24 }
  0xfc   : > { %v1293_v20 = vpop.f32.mrf.mxu1 }
 0x115   : > { %v1311_v26 = vpop.f32.mrf.mxu0 }
 0x117   : > { %v1312_v27 = vpop.f32.mrf.mxu0 }
 0x118   : > { %v1313_v29 = vadd.f32 %v1312_v27, %v1311_v26 }
 0x119   : > { %v1314_v31 = vpop.f32.mrf.mxu0 }
 0x11a   : > { %v848_v32 = vadd.f32 %v1313_v29, %v660_v28 }
 0x11b   : > { %v1315_v33 = vpop.f32.mrf.mxu0 }
 0x11c   : > { %v856_v34 = vadd.f32 %v1245_v30, %v848_v32 }
 0x11e   : > { %v857_v36 = vmax.f32 %v856_v34, 0.0 }
 0x120   : > { %v859_v37 = vmul.f32 %v858_v35, %v857_v36 }
 0x122   : > { %v861_v38 = vsel %vm860_vm1, %v859_v37, -inf }
 0x123   : > { %v862_v39 = vrot.slane %v861_v38, 4 }
 0x125   : > { %v863_v40 = vmax.f32 %v861_v38, %v862_v39 }
 0x127   : > { %v864_v41 = vrot.slane %v863_v40, 2 }
 0x129   : > { %v865_v42 = vmax.f32 %v863_v40, %v864_v41 }
 0x12b   : > { %v866_v43 = vrot.slane %v865_v42, 1 }
 0x12d   : > { %v867_v44 = vmax.f32 %v865_v42, %v866_v43 }
 0x12f   : > { %1384 = vmatmul.mubr.f32.vlgmr.msra.gmra.mxu1 %v867_v44 }
 0x1ef   : > { %v951_v62 = vpop.f32.mrf.mxu1 }
 0x1f0   : > { %v952_v63 = vadd.f32 %v951_v62, %v884_v61 }
 0x1f1   : > { %v1385_v1 = vpop.f32.mrf.mxu1 }
 0x1f2   : > { %v1246_v2 = vmul.f32 -1.442695, %v952_v63  ;;  %v961_v5 = vmax.f32 %v952_v63, 0.0 }
 0x1f4   : > { %1515 = vpow2.f32 %v1246_v2 }
 0x201   : > { %v1516_v3 = vpop.eup %1515 }
 0x202   : > { %v958_v4 = vadd.f32 1.0, %v1516_v3 }
 0x204   : > { %1517 = vrcp.f32 %v958_v4 }
 0x211   : > { %v1518_v0 = vpop.eup %1517 }
 0x212   : > { %v963_v6 = vsub.f32 1.0, %v1518_v0  ;;  %v962_v7 = vmul.f32 %v1518_v0, %v961_v5 }
 0x214   : > { %v964_v8 = vmul.f32 %v963_v6, %v867_v44 }
 0x216   : > { %v965_v9 = vadd.f32 %v964_v8, %v962_v7 }
 0x218   : > { %1419 = vmatmul.mubr.f32.vlgmr.msra.gmra.mxu0 %v965_v9 }
 0x2d8   : > { %v1049_v11 = vpop.f32.mrf.mxu0 }
 0x2d9   : > { %v1050_v12 = vadd.f32 %v1049_v11, %v982_v10 }
 0x2da   : > { %v1420_v13 = vpop.f32.mrf.mxu0 }
 0x2db   : > { %1054 = vst.msk [vmem:[%s297_s26] sm:$0x1] %vm1053_vm2, %v1050_v12 }
 0x2dc   : > { %1532 = shalt.err (!%p1529_p3)
}
 0x2dd   : > { %s1533_s23 = scalar_lea.hbm %s1978_s24, 16  ;;  %s1537_s25 = scalar_lea.hbm %s2021_s8, 32 }
 0x2de   : > { %p1534_p4 = scmp.ne.s32.totalorder %s1978_s24, %s1533_s23  ;;  %p1538_p9 = scmp.lt.s32.totalorder %s1978_s24, %s2021_s8 }
 0x2df   : > { %p1539_p10 = scmp.lt.s32.totalorder %s1537_s25, %s1533_s23 }
 0x2e0   : > { %p1535_p7 = pnand %p1534_p4, %p1667_p5 }
 0x2e1   : > { %p1540_p11 = por %p1539_p10, %p1538_p9 }
 0x2e2   : > { %p1536_p8 = pneg %p1535_p7 }
 0x2e4   : > { %p1541_p12 = pnand %p1540_p11, %p1536_p8 }
 0x2e6   : > { %1544 = shalt.err (!%p1541_p12)
}
 0x2e7   : > { %1421 = dma.vmem_to_hbm [thread:$0]  (%p1667_p5), %s1069_s10, 16, %s1978_s24, %s1056_s18  }
 0x2e8 PF: > { %p1427_p13 = scmp.ge.s32.totalorder %s1579_s30, 2  ;;  %s1080_s13 = sand.u32 1, %s1567_s27  }
 0x2e9   : > { %s1081_s19 = scalar_lea.sflag [#allocation3], %s1080_s13 }
 0x2ea   : > { %p1424_p0 = pnand %p1427_p13, %p1671_p6 }
 0x2ec   : > { %p1425_p1 = pneg %p1424_p0 }
 0x2ee   : > { %1562 = dma.done.wait (%p1425_p1), %s1081_s19, 16  }
 0x2ef   : > { %1564 = vsyncadd (%p1425_p1), %s1081_s19, 4294967280  ;;  %p18_p2 = scmp.ge.s32.totalorder %s1654_s11, 4   ;;  %s2024_s27 = smov %s1571_s28 }
 0x2f0   : > { %s2025_s28 = smov %s1575_s29  ;;  %s2026_s29 = smov %s1665_s14 }
 0x2f1   : > { %s2027_s30 = smov %s1654_s11  ;;  %20 = sbr.rel (!%p18_p2) target bundleno = 3 (0x3), region = 89 }
 0x2f6   :  { %1085 = vsyncpa [#allocation3], 1 }
 0x2f7   :  { %1087 = vsyncpa [#allocation3 + $0x1], 1 }

</bundles_post_ra>
